<compile_context>
chip_gen: v6e
topology: v6e:2x2x1
jax: 0.10.0
libtpu: 0.0.40
codegen_flags: <defaults>
</compile_context>

<pallas_src>
import numpy as np
import jax
import jax.numpy as jnp
from jax.experimental import pallas as pl
from jax.experimental.pallas import tpu as pltpu

_CHAR_TO_ID = {'a': 0, 'c': 1, 'g': 2, 't': 3, 'u': 3, '#': 4}
_OTHER_ID = 5                      # default bucket -> [0.25]*4

_ROWS_PER_TILE = 16                # max batch rows per grid step (even)
_MAX_LANE_TILE = 32768             # max lanes per tile (multiple of 128)
_TARGET_OUT_TILE_BYTES = 4 * 1024 * 1024   # ~4 MiB f32 output per grid step

# 256-entry byte LUT (applied after .lower(), so only lowercase keys + '#').
_LUT = np.full(256, _OTHER_ID, dtype=np.int8)
for _ch, _v in _CHAR_TO_ID.items():
    _LUT[ord(_ch)] = _v


def _round_up(x, m):
    return ((x + m - 1) // m) * m


def _cdiv(a, b):
    return -(-a // b)


def _tile_params(B, L):
    """Choose (rows_per_tile, padded_B, lane_tile, n_lane_tiles, padded_L)."""
    rb = min(_ROWS_PER_TILE, _round_up(max(B, 1), 2))       # even, >= 2
    Bp = _round_up(max(B, 1), rb)
    n_row_tiles = Bp // rb
    L0 = _round_up(max(L, 1), 128)
    k = L0 // 128
    # lane-tile cap targeting ~4 MiB of f32 output per grid step
    cap_lanes = (_TARGET_OUT_TILE_BYTES // (rb * 4 * 4)) // 128 * 128
    cap_lanes = max(128, min(_MAX_LANE_TILE, cap_lanes))
    nj = _cdiv(L0, cap_lanes)
    if n_row_tiles * nj < 2 and k >= 2:
        nj = 2                      # keep both v7x TensorCores busy on small inputs
    TL = 128 * _cdiv(k, nj)
    Lp = TL * nj
    return rb, Bp, TL, nj, Lp


def _onehot_kernel(ids_ref, out_ref):
    # ids_ref: (1, rb, TL) int8/int32 in VMEM
    # out_ref: (rb*4, TL) float32 in VMEM ; row s -> (batch s//4, channel s%4)
    ids = ids_ref[0].astype(jnp.int32)                       # (rb, TL)
    rb, tl = ids.shape

    # Hoisted, p-independent patterns for one 8-sublane (two batch rows) block.
    row = jax.lax.broadcasted_iota(jnp.int32, (8, tl), 0)    # 0..7
    chan = jnp.bitwise_and(row, 3)                           # channel = row % 4
    upper = row >= 4                                         # second batch row

    one = jnp.float32(1.0)
    quarter = jnp.float32(0.25)
    zero = jnp.float32(0.0)

    # Per pair of batch rows: constant VPU work per element, full 8-sublane
    # unmasked stores.  rb <= 16 -> at most 8 unrolled iterations.
    for p in range(rb // 2):
        a = jnp.broadcast_to(ids[2 * p:2 * p + 1, :], (8, tl))
        b = jnp.broadcast_to(ids[2 * p + 1:2 * p + 2, :], (8, tl))
        ids_rep = jnp.where(upper, b, a)
        blk = jnp.where(ids_rep == chan, one,
                        jnp.where(ids_rep == _OTHER_ID, quarter, zero))
        out_ref[8 * p:8 * p + 8, :] = blk


def onehot_embedding_pallas(ids3, lane_tile=None):
    """ids3: (G, rb, Lp) int8/int32 class ids in [0, 5] -> (G*rb*4, Lp) float32.

    Lp must be a multiple of lane_tile (itself a multiple of 128); rb even.
    Output row r corresponds to (batch r//4, channel r%4) of a (G*rb, 4, Lp) tensor.
    """
    G, rb, Lp = ids3.shape
    if lane_tile is None:
        lane_tile = Lp
    assert rb % 2 == 0 and lane_tile % 128 == 0 and Lp % lane_tile == 0
    nj = Lp // lane_tile

    return pl.pallas_call(
        _onehot_kernel,
        out_shape=jax.ShapeDtypeStruct((G * rb * 4, Lp), jnp.float32),
        grid=(G, nj),
        in_specs=[pl.BlockSpec((1, rb, lane_tile), lambda i, j: (i, 0, j))],
        out_specs=pl.BlockSpec((rb * 4, lane_tile), lambda i, j: (i, j)),
        compiler_params=pltpu.CompilerParams(
            dimension_semantics=("parallel", "parallel"),
            vmem_limit_bytes=32 * 1024 * 1024),
    )(ids3)


# ---------- host-side glue (string handling, identical to the module) ----------
# TODO(synk): string parsing / padding has no TPU equivalent; it stays on host
# (vectorized via a 256-entry numpy LUT instead of a per-char dict loop).

def _pad_all(seqs, pad_size):
    pad = 'n' * pad_size
    seqs = [pad + s + pad for s in seqs]
    l = max(len(s) for s in seqs)
    return [s + '0' * (l - len(s)) for s in seqs]


def onehot_embedding_forward(seqs, ksize=0, return_padded=False):
    """Pallas-backed equivalent of OneHotEmbedding(ksize).forward(seqs).

    Returns float32 (B, 4, L) exactly like the PyTorch module.  With
    return_padded=True the (Bp, 4, Lp) tile-aligned buffer is returned instead
    (padding filled with the 0.25 default), avoiding the post-kernel slice copy.
    """
    padded = _pad_all(seqs, ksize // 2)
    B = len(padded)
    L = len(padded[0])
    rb, Bp, TL, nj, Lp = _tile_params(B, L)

    # Host-side padding + string->id conversion (no extra device HBM passes).
    ids_np = np.full((Bp, Lp), _OTHER_ID, dtype=np.int8)
    for i, s in enumerate(padded):
        bts = np.frombuffer(s.lower().encode('latin-1'), dtype=np.uint8)
        ids_np[i, :bts.shape[0]] = _LUT[bts]
    ids3 = jnp.asarray(ids_np.reshape(Bp // rb, rb, Lp))     # free reshape on host

    out_flat = onehot_embedding_pallas(ids3, lane_tile=TL)   # (Bp*4, Lp)
    out = out_flat.reshape(Bp, 4, Lp)
    if return_padded:
        return out
    if Bp != B or Lp != L:
        out = out[:B, :, :L]
    return out


# ---------- pure-numpy reference replicating the PyTorch module exactly ----------

def _ref_forward(seqs, ksize=0):
    from collections import defaultdict
    eye = np.identity(4, dtype=np.float32)
    zero = np.zeros(4, dtype=np.float32)
    onehot = defaultdict(lambda: np.ones(4, dtype=np.float32) / 4,
                         {'a': eye[0], 'c': eye[1], 'g': eye[2], 't': eye[3], 'u': eye[3],
                          'R': zero, '#': zero, 'Y': zero, 'M': zero, 'K': zero, 'S': zero,
                          'W': zero, 'B': zero, 'V': zero, 'D': zero, 'N': zero})
    padded = _pad_all(seqs, ksize // 2)
    return np.stack([np.vstack([onehot[ch] for ch in s.lower()]).T for s in padded])


if __name__ == "__main__":
    # Deterministic example inputs: batch=2 sequences of length 8 and 6, ksize=3.
    key = jax.random.PRNGKey(0)
    alphabet = "ACGTUN#RYacgtun"
    lengths = [8, 6]
    seqs = []
    for i, ln in enumerate(lengths):
        idx = jax.random.randint(jax.random.fold_in(key, i), (ln,), 0, len(alphabet))
        seqs.append("".join(alphabet[int(j)] for j in np.asarray(idx)))

    out = onehot_embedding_forward(seqs, ksize=3)
    out = jax.block_until_ready(out)

    expected = _ref_forward(seqs, ksize=3)
    assert out.shape == expected.shape, (out.shape, expected.shape)
    assert out.dtype == jnp.float32
    np.testing.assert_allclose(np.asarray(out), expected, rtol=0, atol=0)
    print("KERNEL_OK")
</pallas_src>

<mosaic_0001>
module attributes {stable_mosaic.version = 11 : i64} {
  func.func @_onehot_kernel(%arg0: i32, %arg1: i32, %arg2: memref<1x2x128xi8, #tpu.memory_space<vmem>>, %arg3: memref<8x128xf32, #tpu.memory_space<vmem>>) attributes {dimension_semantics = [#tpu.dimension_semantics<parallel>, #tpu.dimension_semantics<parallel>], iteration_bounds = array<i64: 1, 1>, scalar_prefetch = 0 : i64, scratch_operands = 0 : i64, tpu.core_type = #tpu.core_type<tc>, window_params = [{transform_indices = @transform_0, window_bounds = array<i64: 1, 2, 128>}, {transform_indices = @transform_1, window_bounds = array<i64: 8, 128>}]} {
    %c0 = arith.constant 0 : index
    %c0_0 = arith.constant 0 : index
    %c0_1 = arith.constant 0 : index
    %0 = vector.load %arg2[%c0, %c0_0, %c0_1] : memref<1x2x128xi8, #tpu.memory_space<vmem>>, vector<1x2x128xi8>
    %1 = vector.shape_cast %0 : vector<1x2x128xi8> to vector<2x128xi8>
    %2 = arith.extsi %1 : vector<2x128xi8> to vector<2x128xi32>
    %3 = tpu.iota {dimensions = array<i32: 0>} : vector<8x128xi32>
    %c3_i32 = arith.constant 3 : i32
    %4 = vector.broadcast %c3_i32 : i32 to vector<8x128xi32>
    %5 = arith.andi %3, %4 : vector<8x128xi32>
    %c4_i32 = arith.constant 4 : i32
    %6 = vector.broadcast %c4_i32 : i32 to vector<8x128xi32>
    %7 = arith.cmpi sge, %3, %6 : vector<8x128xi32>
    %8 = vector.extract_strided_slice %2 {offsets = [0, 0], sizes = [1, 128], strides = [1, 1]} : vector<2x128xi32> to vector<1x128xi32>
    %9 = vector.shape_cast %8 : vector<1x128xi32> to vector<1x128xi32>
    %10 = vector.broadcast %9 : vector<1x128xi32> to vector<8x128xi32>
    %11 = vector.extract_strided_slice %2 {offsets = [1, 0], sizes = [1, 128], strides = [1, 1]} : vector<2x128xi32> to vector<1x128xi32>
    %12 = vector.shape_cast %11 : vector<1x128xi32> to vector<1x128xi32>
    %13 = vector.broadcast %12 : vector<1x128xi32> to vector<8x128xi32>
    %14 = arith.select %7, %13, %10 : vector<8x128xi1>, vector<8x128xi32>
    %15 = arith.cmpi eq, %14, %5 : vector<8x128xi32>
    %c5_i32 = arith.constant 5 : i32
    %16 = vector.broadcast %c5_i32 : i32 to vector<8x128xi32>
    %17 = arith.cmpi eq, %14, %16 : vector<8x128xi32>
    %cst = arith.constant 2.500000e-01 : f32
    %cst_2 = arith.constant 0.000000e+00 : f32
    %18 = vector.broadcast %cst : f32 to vector<8x128xf32>
    %19 = vector.broadcast %cst_2 : f32 to vector<8x128xf32>
    %20 = arith.select %17, %18, %19 : vector<8x128xi1>, vector<8x128xf32>
    %cst_3 = arith.constant 1.000000e+00 : f32
    %21 = vector.broadcast %cst_3 : f32 to vector<8x128xf32>
    %22 = arith.select %15, %21, %20 : vector<8x128xi1>, vector<8x128xf32>
    %c0_4 = arith.constant 0 : index
    %c0_5 = arith.constant 0 : index
    %23 = vector.load %arg3[%c0_4, %c0_5] : memref<8x128xf32, #tpu.memory_space<vmem>>, vector<8x128xf32>
    tpu.vector_store %arg3[%c0_4, %c0_5], %22 {strides = array<i32>} : memref<8x128xf32, #tpu.memory_space<vmem>>, vector<8x128xf32>,
    return
  }
  func.func @transform_0(%arg0: i32, %arg1: i32) -> (i32, i32, i32) {
    %c0_i32 = arith.constant 0 : i32
    %c0_i32_0 = arith.constant 0 : i32
    return %arg0, %c0_i32, %arg1 : i32, i32, i32
  }
  func.func @transform_1(%arg0: i32, %arg1: i32) -> (i32, i32) {
    %c0_i32 = arith.constant 0 : i32
    return %arg0, %arg1 : i32, i32
  }
}

</mosaic_0001>

<bundles_post_ra>
// kernel: tpu_custom_call.1
= control target key start
LH: loop header
LB: loop body
LE: loop exit
PB: predicated region body
PF: predicated region fallthrough
CT: control target
= control target key end

     0   :  { %6 = vsyncpa [#allocation3], 0  ;;  %s122_s0 = inlined_call_operand.hbm [shape: s8[1,2,128], index: 0, kind: input, shape index: {}]   ;;  %s123_s1 = inlined_call_operand.hbm [shape: f32[8,128], index: 1, kind: output, shape index: {}]  }
   0x1   :  { %7 = vsyncpa [#allocation4], 0  ;;  %s103_s6 = smov [#allocation2]  }
   0x2   :  { %s14_s7 = sshll.u32 %s103_s6, 4  ;;  %s15_s7 = int_to_ptr.vmem [resolvable:$true] %s14_s7 }
   0x3   :  { %s67_s8 = scalar_lea.vmem %s15_s7, 16  ;;  %s71_s9 = scalar_lea.vmem %s15_s7, 32 }
   0x4   :  { %p68_p0 = scmp.ne.s32.totalorder %s15_s7, %s67_s8  ;;  %p72_p1 = scmp.lt.s32.totalorder %s15_s7, %s15_s7 }
   0x5   :  { %p73_p2 = scmp.lt.s32.totalorder %s71_s9, %s67_s8 }
   0x7   :  { %p74_p3 = por %p73_p2, %p72_p1 }
   0x9   :  { %p75_p4 = pnand %p74_p3, %p68_p0 }
   0xb   :  { %78 = shalt.err (!%p75_p4)
}
   0xc   :  { %17 = dma.hbm_to_vmem [thread:$0]  %s122_s0, 16, %s15_s7, [#allocation3]  }
   0xd   :  { %99 = dma.done.wait [#allocation3], 16  }
   0xe   :  { %100 = vsyncadd [#allocation3], 4294967280  ;;  %v23_v0 = vlaneseq  ;;  %v21_v4 = vld [vmem:[#allocation2] sm:$0x1]  ;;  %s104_s12 = smov [#allocation5]   ;;  %v105_v10 = vmov 0.0  }
   0xf   :  { %v22_v5 = vunpack.c.0.s8 %v21_v4  ;;  %s47_s13 = sshll.u32 %s104_s12, 4  ;;  %s48_s13 = int_to_ptr.vmem [resolvable:$true] %s47_s13 }
  0x10   :  { %v24_v1 = vshrl.u32 %v23_v0, 7  ;;  %s79_s0 = scalar_lea.vmem %s48_s13, 128  ;;  %p84_p6 = scmp.lt.s32.totalorder %s48_s13, %s48_s13 }
  0x11   :  { %p80_p5 = scmp.ne.s32.totalorder %s48_s13, %s79_s0  ;;  %p85_p7 = scmp.lt.s32.totalorder %s79_s0, %s79_s0 }
  0x12   :  { %v29_v2 = vsub.s32 0, %v24_v1  ;;  %v33_v3 = vsub.s32 1, %v24_v1  ;;  %v25_v6 = vand.u32 3, %v24_v1  ;;  %vm26_vm0 = vcmp.ge.s32.totalorder %v24_v1, 4 }
  0x13   :  { %p86_p8 = por %p85_p7, %p84_p6 }
  0x14   :  { %v30_v7 = vrot.slane %v22_v5, %v29_v2  ;;  %v34_v8 = vrot.slane %v22_v5, %v33_v3 }
  0x15   :  { %p87_p9 = pnand %p86_p8, %p80_p5 }
  0x16   :  { %v35_v9 = vsel %vm26_vm0, %v34_v8, %v30_v7 }
  0x17   :  { %vm36_vm1 = vcmp.eq.s32.totalorder %v35_v9, %v25_v6  ;;  %vm37_vm2 = vcmp.eq.s32.totalorder %v35_v9, 5 }
  0x18   :  { %v38_v11 = vsel %vm37_vm2, 0.25, %v105_v10 }
  0x19   :  { %v39_v12 = vsel %vm36_vm1, 1.0, %v38_v11 }
  0x1a   :  { %40 = vst [vmem:[#allocation5] sm:$0xff] %v39_v12 }
  0x1b   :  { %90 = shalt.err (!%p87_p9)
}
  0x1c   :  { %50 = dma.vmem_to_hbm [thread:$0]  %s48_s13, 128, %s123_s1, [#allocation4]  }
  0x1d   :  { %101 = dma.done.wait [#allocation4], 128  }
  0x1e   :  { %102 = vsyncadd [#allocation4], 4294967168 }
  0x1f   :  { %54 = vsyncpa [#allocation3], 1 }
  0x20   :  { %55 = vsyncpa [#allocation4], 1 }

</bundles_post_ra>
